<compile_context>
chip_gen: v7x
topology: tpu7x:2x2x1
jax: 0.10.0
libtpu: 0.0.40
codegen_flags: <defaults>
</compile_context>

<pallas_src>
import functools

import jax
import jax.numpy as jnp
from jax.experimental import pallas as pl
from jax.experimental.pallas import tpu as pltpu

EPS = 1e-5  # nn.BatchNorm1d default eps

# VMEM scoped limit for the kernel: fits v7x (64 MiB physical) with headroom and
# is well under v5e/v6e's 128 MiB; also lifts v5e's 16 MiB default scoped limit.
_VMEM_LIMIT_BYTES = 48 * 1024 * 1024
# Resident-footprint budget for the gridless design (fail fast above this).
_VMEM_BUDGET_BYTES = 40 * 1024 * 1024


# ---------------------------------------------------------------------------
# Kernel
# ---------------------------------------------------------------------------
def _bn_train_fused(x, gamma, beta):
    """Training-mode BatchNorm1d (biased var), one-pass stats, folded scale/shift."""
    inv_n = 1.0 / x.shape[0]
    mean = jnp.sum(x, axis=0, keepdims=True) * inv_n
    mean_sq = jnp.sum(x * x, axis=0, keepdims=True) * inv_n
    # Clamp: E[x^2]-E[x]^2 can cancel slightly negative in f32 -> rsqrt NaN.
    var = jnp.maximum(mean_sq - mean * mean, 0.0)
    scale = gamma * jax.lax.rsqrt(var + EPS)      # [1, d]
    shift = beta - mean * scale                   # [1, d]
    return x * scale + shift                      # single fused broadcast FMA


def encoder_kernel(x_ref, w1_ref, w2_ref, bn_ref, out_ref, *, hidden, out_dim):
    """x_ref : [B, W+WFS]   bf16, concat of [attention | attended_input_flat].
       w1_ref: [W+WFS, 2H]  bf16, block-diagonal (W1a, W1b).
       w2_ref: [2H, 2O]     bf16, block-diagonal (W2a, W2b).
       bn_ref: [4, max(2H,2O)] f32, rows = g1|be1|g2|be2 (branch A,B concatenated)."""
    h2 = 2 * hidden
    o2 = 2 * out_dim

    # ---- layer 1: both branches in one bf16 MXU pass, f32 accumulation ----
    h = jnp.dot(x_ref[...], w1_ref[...], preferred_element_type=jnp.float32)
    h = _bn_train_fused(h, bn_ref[0:1, :h2], bn_ref[1:2, :h2])
    h = jnp.maximum(h, 0.0).astype(jnp.bfloat16)              # ReLU + bf16 for MXU

    # ---- layer 2: both branches in one bf16 MXU pass ----
    y = jnp.dot(h, w2_ref[...], preferred_element_type=jnp.float32)
    y = _bn_train_fused(y, bn_ref[2:3, :o2], bn_ref[3:4, :o2])

    # ---- aggregate = ReLU(branchA + branchB) ----
    out_ref[...] = jnp.maximum(y[:, :out_dim] + y[:, out_dim:o2], 0.0)


# ---------------------------------------------------------------------------
# Parameter packing (call ONCE per parameter update, not per forward)
# ---------------------------------------------------------------------------
def _block_diag(a, b):
    ra, ca = a.shape
    rb, cb = b.shape
    top = jnp.concatenate([a, jnp.zeros((ra, cb), a.dtype)], axis=1)
    bot = jnp.concatenate([jnp.zeros((rb, ca), b.dtype), b], axis=1)
    return jnp.concatenate([top, bot], axis=0)


def pack_params(params):
    """Collapse the 16 Encoder parameters into the 3 kernel operands.

    Linear biases (b1a/b2a/b1b/b2b) are intentionally dropped: they cancel
    exactly under the following training-mode BatchNorm."""
    w1 = _block_diag(params["w1a"], params["w1b"]).astype(jnp.bfloat16)
    w2 = _block_diag(params["w2a"], params["w2b"]).astype(jnp.bfloat16)

    h2 = 2 * params["w1a"].shape[1]
    o2 = 2 * params["w2a"].shape[1]
    d = max(h2, o2)

    def row(a, b):
        v = jnp.concatenate([a[0], b[0]]).astype(jnp.float32)
        return jnp.pad(v, (0, d - v.shape[0]))

    bn = jnp.stack([row(params["g1a"], params["g1b"]),
                    row(params["be1a"], params["be1b"]),
                    row(params["g2a"], params["g2b"]),
                    row(params["be2a"], params["be2b"])])
    return {"w1": w1, "w2": w2, "bn": bn}


# ---------------------------------------------------------------------------
# Forward
# ---------------------------------------------------------------------------
def _vmem_resident_bytes(batch, k, hidden, out_dim):
    """Rough resident-VMEM estimate for the gridless kernel (with (8,128) padding)."""
    h2, o2 = 2 * hidden, 2 * out_dim
    lane = lambda n: max(-(-n // 128) * 128, 128)
    sub = lambda n: max(-(-n // 8) * 8, 8)
    operands = (sub(batch) * lane(k) * 2            # x_cat  bf16
                + sub(k) * lane(h2) * 2             # w1     bf16
                + sub(h2) * lane(o2) * 2            # w2     bf16
                + 8 * lane(max(h2, o2)) * 4         # bn     f32
                + sub(batch) * lane(out_dim) * 4)   # out    f32
    interm = sub(batch) * (lane(h2) * (4 + 2) + lane(o2) * 4)  # h f32/bf16, y f32
    return 2 * (operands + interm)                  # 2x headroom (compiler scratch)


@jax.jit
def encoder_forward(attention, attended_input, packed):
    """attention: [B, window_size]; attended_input: [B, window_size, feature]."""
    B, W, F = attended_input.shape
    WFS = W * F
    w1, w2, bn = packed["w1"], packed["w2"], packed["bn"]
    hidden = w1.shape[1] // 2
    out_dim = w2.shape[1] // 2

    est = _vmem_resident_bytes(B, W + WFS, hidden, out_dim)
    if est > _VMEM_BUDGET_BYTES:
        raise ValueError(
            f"Gridless Encoder kernel footprint ~{est} B exceeds the "
            f"{_VMEM_BUDGET_BYTES} B VMEM budget (v7x has 64 MiB physical). "
            "Use the batch-gridded two-pass BN variant (see TODO(synk)).")

    # Hot-path glue: concat the two branch inputs and cast once for the MXU.
    x_cat = jnp.concatenate(
        [attention, attended_input.reshape(B, WFS)], axis=1).astype(jnp.bfloat16)

    vmem_spec = pl.BlockSpec(memory_space=pltpu.MemorySpace.VMEM)
    kernel = functools.partial(encoder_kernel, hidden=hidden, out_dim=out_dim)
    return pl.pallas_call(
        kernel,
        out_shape=jax.ShapeDtypeStruct((B, out_dim), jnp.float32),
        in_specs=[vmem_spec] * 4,
        out_specs=vmem_spec,
        compiler_params=pltpu.CompilerParams(vmem_limit_bytes=_VMEM_LIMIT_BYTES),
    )(x_cat, w1, w2, bn)


# ---------------------------------------------------------------------------
# Reference (pure JAX f32, mirrors the PyTorch module exactly, incl. biases)
# ---------------------------------------------------------------------------
def _bn_train_ref(x, gamma, beta):
    mean = jnp.mean(x, axis=0, keepdims=True)
    var = jnp.mean((x - mean) ** 2, axis=0, keepdims=True)
    return (x - mean) * jax.lax.rsqrt(var + EPS) * gamma + beta


def reference_forward(attention, attended_input, p):
    B, W, F = attended_input.shape
    x = attended_input.reshape(B, W * F)
    ha = jnp.maximum(
        _bn_train_ref(attention @ p["w1a"] + p["b1a"], p["g1a"], p["be1a"]), 0.0)
    ya = _bn_train_ref(ha @ p["w2a"] + p["b2a"], p["g2a"], p["be2a"])
    hb = jnp.maximum(
        _bn_train_ref(x @ p["w1b"] + p["b1b"], p["g1b"], p["be1b"]), 0.0)
    yb = _bn_train_ref(hb @ p["w2b"] + p["b2b"], p["g2b"], p["be2b"])
    return jnp.maximum(ya + yb, 0.0)


def make_params(key, window_size, window_feature_size, hidden, out):
    """Deterministic synthetic parameters (PyTorch Linear weight is [out,in];
    we store the transpose [in,out] for direct x @ W use)."""
    ks = jax.random.split(key, 8)

    def lin(k, din, dout):
        kw, kb = jax.random.split(k)
        w = jax.random.normal(kw, (din, dout), jnp.float32) * 0.1
        b = jax.random.normal(kb, (1, dout), jnp.float32) * 0.1
        return w, b

    def bn(k, d):
        kg, kb = jax.random.split(k)
        g = 1.0 + 0.1 * jax.random.normal(kg, (1, d), jnp.float32)
        b = 0.1 * jax.random.normal(kb, (1, d), jnp.float32)
        return g, b

    w1a, b1a = lin(ks[0], window_size, hidden)
    g1a, be1a = bn(ks[1], hidden)
    w2a, b2a = lin(ks[2], hidden, out)
    g2a, be2a = bn(ks[3], out)
    w1b, b1b = lin(ks[4], window_feature_size, hidden)
    g1b, be1b = bn(ks[5], hidden)
    w2b, b2b = lin(ks[6], hidden, out)
    g2b, be2b = bn(ks[7], out)
    return dict(w1a=w1a, b1a=b1a, g1a=g1a, be1a=be1a,
                w2a=w2a, b2a=b2a, g2a=g2a, be2a=be2a,
                w1b=w1b, b1b=b1b, g1b=g1b, be1b=be1b,
                w2b=w2b, b2b=b2b, g2b=g2b, be2b=be2b)


if __name__ == "__main__":
    # Small shapes consistent with the module:
    #   batch=8, window_size=8, feature_size=4  ->  window_feature_size=32
    #   encoder_hidden_size=32, encoder_output_size=32
    B, WINDOW, FEAT = 8, 8, 4
    HIDDEN, OUT = 32, 32
    WFS = WINDOW * FEAT

    key = jax.random.PRNGKey(0)
    k_attn, k_x, k_par = jax.random.split(key, 3)
    attention = jax.random.normal(k_attn, (B, WINDOW), jnp.float32)
    attended_input = jax.random.normal(k_x, (B, WINDOW, FEAT), jnp.float32)
    params = make_params(k_par, WINDOW, WFS, HIDDEN, OUT)

    # One-time packing (per parameter update), outside the hot path.
    packed = jax.block_until_ready(pack_params(params))

    out = encoder_forward(attention, attended_input, packed)
    out = jax.block_until_ready(out)

    ref = reference_forward(attention, attended_input, params)
    assert out.shape == (B, OUT)
    assert bool(jnp.all(jnp.isfinite(out)))
    # Loose tolerance: kernel feeds bf16 operands to the MXU (f32 accumulation),
    # reference is pure f32.
    assert jnp.allclose(out, ref, atol=1e-1, rtol=1e-1)

    print("KERNEL_OK")
</pallas_src>

<mosaic_0001>
module attributes {stable_mosaic.version = 11 : i64} {
  func.func @encoder_kernel(%arg0: memref<8x40xbf16, #tpu.memory_space<vmem>>, %arg1: memref<40x64xbf16, #tpu.memory_space<vmem>>, %arg2: memref<64x64xbf16, #tpu.memory_space<vmem>>, %arg3: memref<4x64xf32, #tpu.memory_space<vmem>>, %arg4: memref<8x32xf32, #tpu.memory_space<vmem>>) attributes {dimension_semantics = [], scalar_prefetch = 0 : i64, scratch_operands = 0 : i64, tpu.core_type = #tpu.core_type<tc>} {
    %c0 = arith.constant 0 : index
    %c0_0 = arith.constant 0 : index
    %0 = vector.load %arg0[%c0, %c0_0] : memref<8x40xbf16, #tpu.memory_space<vmem>>, vector<8x40xbf16>
    %c0_1 = arith.constant 0 : index
    %c0_2 = arith.constant 0 : index
    %1 = vector.load %arg1[%c0_1, %c0_2] : memref<40x64xbf16, #tpu.memory_space<vmem>>, vector<40x64xbf16>
    %cst = arith.constant dense<0.000000e+00> : vector<8x64xf32>
    %2 = tpu.matmul %0, %1, %cst {dimension_numbers = #tpu.dot_dimension_numbers<[1], [0], [0], [1], [0, 0, 1, 1], [], []>} : vector<8x40xbf16>, vector<40x64xbf16>, vector<8x64xf32> -> vector<8x64xf32>
    %c0_3 = arith.constant 0 : index
    %c0_4 = arith.constant 0 : index
    %3 = vector.load %arg3[%c0_3, %c0_4] : memref<4x64xf32, #tpu.memory_space<vmem>>, vector<1x64xf32>
    %c1 = arith.constant 1 : index
    %c0_5 = arith.constant 0 : index
    %4 = vector.load %arg3[%c1, %c0_5] : memref<4x64xf32, #tpu.memory_space<vmem>>, vector<1x64xf32>
    %cst_6 = arith.constant dense<0.000000e+00> : vector<64xf32>
    %5 = vector.multi_reduction <add>, %2, %cst_6 [0] : vector<8x64xf32> to vector<64xf32>
    %6 = vector.shape_cast %5 : vector<64xf32> to vector<1x64xf32>
    %cst_7 = arith.constant 1.250000e-01 : f32
    %7 = vector.broadcast %cst_7 : f32 to vector<1x64xf32>
    %8 = arith.mulf %6, %7 : vector<1x64xf32>
    %9 = arith.mulf %2, %2 : vector<8x64xf32>
    %cst_8 = arith.constant dense<0.000000e+00> : vector<64xf32>
    %10 = vector.multi_reduction <add>, %9, %cst_8 [0] : vector<8x64xf32> to vector<64xf32>
    %11 = vector.shape_cast %10 : vector<64xf32> to vector<1x64xf32>
    %cst_9 = arith.constant 1.250000e-01 : f32
    %12 = vector.broadcast %cst_9 : f32 to vector<1x64xf32>
    %13 = arith.mulf %11, %12 : vector<1x64xf32>
    %14 = arith.mulf %8, %8 : vector<1x64xf32>
    %15 = arith.subf %13, %14 : vector<1x64xf32>
    %cst_10 = arith.constant 0.000000e+00 : f32
    %16 = vector.broadcast %cst_10 : f32 to vector<1x64xf32>
    %17 = arith.maximumf %15, %16 : vector<1x64xf32>
    %cst_11 = arith.constant 9.99999974E-6 : f32
    %18 = vector.broadcast %cst_11 : f32 to vector<1x64xf32>
    %19 = arith.addf %17, %18 : vector<1x64xf32>
    %20 = math.rsqrt %19 : vector<1x64xf32>
    %21 = arith.mulf %3, %20 : vector<1x64xf32>
    %22 = arith.mulf %8, %21 : vector<1x64xf32>
    %23 = arith.subf %4, %22 : vector<1x64xf32>
    %24 = vector.broadcast %21 : vector<1x64xf32> to vector<8x64xf32>
    %25 = arith.mulf %2, %24 : vector<8x64xf32>
    %26 = vector.broadcast %23 : vector<1x64xf32> to vector<8x64xf32>
    %27 = arith.addf %25, %26 : vector<8x64xf32>
    %cst_12 = arith.constant 0.000000e+00 : f32
    %28 = vector.broadcast %cst_12 : f32 to vector<8x64xf32>
    %29 = arith.maximumf %27, %28 : vector<8x64xf32>
    %30 = arith.truncf %29 : vector<8x64xf32> to vector<8x64xbf16>
    %c0_13 = arith.constant 0 : index
    %c0_14 = arith.constant 0 : index
    %31 = vector.load %arg2[%c0_13, %c0_14] : memref<64x64xbf16, #tpu.memory_space<vmem>>, vector<64x64xbf16>
    %cst_15 = arith.constant dense<0.000000e+00> : vector<8x64xf32>
    %32 = tpu.matmul %30, %31, %cst_15 {dimension_numbers = #tpu.dot_dimension_numbers<[1], [0], [0], [1], [0, 0, 1, 1], [], []>} : vector<8x64xbf16>, vector<64x64xbf16>, vector<8x64xf32> -> vector<8x64xf32>
    %c2 = arith.constant 2 : index
    %c0_16 = arith.constant 0 : index
    %33 = vector.load %arg3[%c2, %c0_16] : memref<4x64xf32, #tpu.memory_space<vmem>>, vector<1x64xf32>
    %c3 = arith.constant 3 : index
    %c0_17 = arith.constant 0 : index
    %34 = vector.load %arg3[%c3, %c0_17] : memref<4x64xf32, #tpu.memory_space<vmem>>, vector<1x64xf32>
    %cst_18 = arith.constant dense<0.000000e+00> : vector<64xf32>
    %35 = vector.multi_reduction <add>, %32, %cst_18 [0] : vector<8x64xf32> to vector<64xf32>
    %36 = vector.shape_cast %35 : vector<64xf32> to vector<1x64xf32>
    %cst_19 = arith.constant 1.250000e-01 : f32
    %37 = vector.broadcast %cst_19 : f32 to vector<1x64xf32>
    %38 = arith.mulf %36, %37 : vector<1x64xf32>
    %39 = arith.mulf %32, %32 : vector<8x64xf32>
    %cst_20 = arith.constant dense<0.000000e+00> : vector<64xf32>
    %40 = vector.multi_reduction <add>, %39, %cst_20 [0] : vector<8x64xf32> to vector<64xf32>
    %41 = vector.shape_cast %40 : vector<64xf32> to vector<1x64xf32>
    %cst_21 = arith.constant 1.250000e-01 : f32
    %42 = vector.broadcast %cst_21 : f32 to vector<1x64xf32>
    %43 = arith.mulf %41, %42 : vector<1x64xf32>
    %44 = arith.mulf %38, %38 : vector<1x64xf32>
    %45 = arith.subf %43, %44 : vector<1x64xf32>
    %cst_22 = arith.constant 0.000000e+00 : f32
    %46 = vector.broadcast %cst_22 : f32 to vector<1x64xf32>
    %47 = arith.maximumf %45, %46 : vector<1x64xf32>
    %cst_23 = arith.constant 9.99999974E-6 : f32
    %48 = vector.broadcast %cst_23 : f32 to vector<1x64xf32>
    %49 = arith.addf %47, %48 : vector<1x64xf32>
    %50 = math.rsqrt %49 : vector<1x64xf32>
    %51 = arith.mulf %33, %50 : vector<1x64xf32>
    %52 = arith.mulf %38, %51 : vector<1x64xf32>
    %53 = arith.subf %34, %52 : vector<1x64xf32>
    %54 = vector.broadcast %51 : vector<1x64xf32> to vector<8x64xf32>
    %55 = arith.mulf %32, %54 : vector<8x64xf32>
    %56 = vector.broadcast %53 : vector<1x64xf32> to vector<8x64xf32>
    %57 = arith.addf %55, %56 : vector<8x64xf32>
    %58 = vector.extract_strided_slice %57 {offsets = [0, 0], sizes = [8, 32], strides = [1, 1]} : vector<8x64xf32> to vector<8x32xf32>
    %59 = vector.extract_strided_slice %57 {offsets = [0, 32], sizes = [8, 32], strides = [1, 1]} : vector<8x64xf32> to vector<8x32xf32>
    %60 = arith.addf %58, %59 : vector<8x32xf32>
    %cst_24 = arith.constant 0.000000e+00 : f32
    %61 = vector.broadcast %cst_24 : f32 to vector<8x32xf32>
    %62 = arith.maximumf %60, %61 : vector<8x32xf32>
    %c0_25 = arith.constant 0 : index
    %c0_26 = arith.constant 0 : index
    %63 = vector.load %arg4[%c0_25, %c0_26] : memref<8x32xf32, #tpu.memory_space<vmem>>, vector<8x32xf32>
    tpu.vector_store %arg4[%c0_25, %c0_26], %62 {strides = array<i32>} : memref<8x32xf32, #tpu.memory_space<vmem>>, vector<8x32xf32>,
    return
  }
}

</mosaic_0001>

<bundles_post_ra>
// kernel: encoder_forward.1
= control target key start
LH: loop header
LB: loop body
LE: loop exit
PB: predicated region body
PF: predicated region fallthrough
CT: control target
= control target key end

     0   :  { %v341_v1 = vmov 0.0   ;;  %vm342_vm0 = vmmov 0   ;;  %vm44_vm1 = vcmask 1043456   ;;  %s423_s0 = inlined_call_operand.vmem [shape: bf16[8,40], index: 0, kind: input, shape index: {}]   ;;  %s424_s1 = inlined_call_operand.vmem [shape: bf16[40,64], index: 1, kind: input, shape index: {}]   ;;  %s425_s2 = inlined_call_operand.vmem [shape: bf16[64,64], index: 2, kind: input, shape index: {}]   ;;  %s426_s3 = inlined_call_operand.vmem [shape: f32[4,64], index: 3, kind: input, shape index: {}]   ;;  %s427_s4 = inlined_call_operand.hbm [shape: f32[8,32], index: 4, kind: output, shape index: {}]  }
   0x1   :  { %v306_v0 = vld [vmem:[%s424_s1] sm:$0xff]   ;;  %280 = vmatprep.subr.bf16.mxu0 %v341_v1  ;;  %290 = vmatprep.subr.bf16.mxu1 %v341_v1  ;;  %v307_v2 = vld [vmem:[%s424_s1 + $0x8] sm:$0xff]   ;;  %v308_v3 = vld [vmem:[%s424_s1 + $0x10] ss:$0 sps:$4 sm:$0xff]  }
   0x2   :  { %281 = vmatpush3.bf16.msra.mxu0 %v306_v0  ;;  %286 = vmatprep.mubr.msk.bf16.mxu0 %vm342_vm0, %v341_v1 }
   0x3   :  { %282 = vmatprep.subr.bf16.mxu0 %v341_v1  ;;  %298 = vmatprep.mubr.msk.bf16.mxu1 %vm342_vm0, %v341_v1 }
   0x6   :  { %283 = vmatpush3.bf16.msra.mxu0 %v307_v2 }
   0x7   :  { %9 = vsyncpa [#allocation3], 0  ;;  %284 = vmatprep.subr.bf16.mxu0 %v341_v1  ;;  %v46_v4 = vsel %vm44_vm1, %v308_v3, 0  ;;  %v19_v5 = vld [vmem:[%s423_s0] sm:$0xf]  ;;  %vm40_vm2 = vcmask 326656   ;;  %v116_v35 = vlaneseq }
   0x8   :  { %v309_v6 = vld [vmem:[%s425_s2] sm:$0xff]   ;;  %v310_v7 = vld [vmem:[%s425_s2 + $0x8] sm:$0xff]   ;;  %v311_v8 = vld [vmem:[%s425_s2 + $0x10] sm:$0xff]   ;;  %vm90_vm3 = vcmask 523264   ;;  %s343_s10 = smov 96   ;;  %s344_s11 = smov [#allocation2]  }
   0x9   :  { %291 = vmatpush3.bf16.msra.mxu1 %v309_v6  ;;  %v312_v9 = vld [vmem:[%s425_s2 + $0x18] sm:$0xff]   ;;  %v117_v36 = vshrl.u32 %v116_v35, 7  ;;  %v88_v37 = vld [vmem:[%s426_s3] sm:$0x1]  ;;  %v89_v41 = vld [vmem:[%s426_s3 + $0x1] sm:$0x1] }
   0xa   :  { %285 = vmatpush3.bf16.msra.mxu0 %v46_v4  ;;  %292 = vmatprep.subr.bf16.mxu1 %v341_v1  ;;  %s254_s12 = sshll.u32 %s344_s11, 4  ;;  %vm246_vm4 = vcmask 261120   ;;  %s255_s12 = int_to_ptr.vmem [resolvable:$true] %s254_s12 }
   0xb   :  { %v118_v38 = vsub.s32 0, %v117_v36  ;;  %s317_s13 = scalar_lea.vmem %s255_s12, 128  ;;  %p322_p1 = scmp.lt.s32.totalorder %s255_s12, %s255_s12 }
   0xc   :  { %p318_p0 = scmp.ne.s32.totalorder %s255_s12, %s317_s13  ;;  %p323_p2 = scmp.lt.s32.totalorder %s317_s13, %s317_s13 }
   0xd   :  { %287 = vmatmul.mubr.msk.bf16.vlgmr.msra.gmra.mrb[0].mxu0 %vm40_vm2, %v19_v5  ;;  %293 = vmatpush3.bf16.msra.mxu1 %v310_v7 }
   0xe   :  { %294 = vmatprep.subr.bf16.mxu1 %v341_v1  ;;  %p324_p3 = por %p323_p2, %p322_p1 }
  0x10   :  { %p325_p4 = pnand %p324_p3, %p318_p0 }
  0x11   :  { %295 = vmatpush3.bf16.msra.mxu1 %v311_v8 }
  0x12   :  { %296 = vmatprep.subr.bf16.mxu1 %v341_v1 }
  0x15   :  { %297 = vmatpush3.bf16.msra.mxu1 %v312_v9 }
  0xe0   :  { %v82_v10 = vpop.f32.mrb[0].mxu0 }
  0xe1   :  { %v91_v11 = vsel %vm90_vm3, %v82_v10, 0.0  ;;  %v99_v12 = vmul.f32 %v82_v10, %v82_v10  ;;  %v288_v13 = vpop.f32.mrb[1].mxu0 }
  0xe2   :  { %v92_v14 = vrot.slane %v91_v11, 4  ;;  %v85_v15 = vpop.f32.mrb[2].mxu0 }
  0xe3   :  { %v100_v16 = vsel %vm90_vm3, %v99_v12, 0.0  ;;  %v289_v17 = vpop.f32.mrb[3].mxu0 }
  0xe4   :  { %v93_v18 = vadd.f32 %v92_v14, %v91_v11  ;;  %v101_v19 = vrot.slane %v100_v16, 4  ;;  %v203_v11 = vld [vmem:[%s426_s3 + $0x2] sm:$0x1]  ;;  %v204_v14 = vld [vmem:[%s426_s3 + $0x3] sm:$0x1] }
  0xe6   :  { %v94_v20 = vrot.slane %v93_v18, 2  ;;  %v102_v21 = vadd.f32 %v101_v19, %v100_v16 }
  0xe8   :  { %v95_v22 = vadd.f32 %v94_v20, %v93_v18  ;;  %v103_v23 = vrot.slane %v102_v21, 2 }
  0xea   :  { %v96_v24 = vrot.slane %v95_v22, 1  ;;  %v104_v25 = vadd.f32 %v103_v23, %v102_v21 }
  0xec   :  { %v97_v26 = vadd.f32 %v96_v24, %v95_v22  ;;  %v105_v27 = vrot.slane %v104_v25, 1 }
  0xee   :  { %v98_v28 = vmul.f32 0.125, %v97_v26  ;;  %v106_v29 = vadd.f32 %v105_v27, %v104_v25 }
  0xf0   :  { %v107_v30 = vmul.f32 0.125, %v106_v29  ;;  %v108_v31 = vmul.f32 %v98_v28, %v98_v28 }
  0xf2   :  { %v109_v32 = vsub.f32 %v107_v30, %v108_v31 }
  0xf4   :  { %v110_v33 = vmax.f32 %v109_v32, 0.0 }
  0xf6   :  { %v111_v34 = vadd.f32 1e-05, %v110_v33 }
  0xf8   :  { %313 = vrsqrt.f32 %v111_v34 }
 0x102   :  { %v314_v39 = vpop.eup %313 }
 0x103   :  { %v113_v40 = vmul.f32 %v314_v39, %v88_v37 }
 0x105   :  { %v114_v42 = vmul.f32 %v113_v40, %v98_v28  ;;  %v119_v43 = vrot.slane %v113_v40, %v118_v38 }
 0x107   :  { %v115_v44 = vsub.f32 %v89_v41, %v114_v42  ;;  %v120_v45 = vmul.f32 %v119_v43, %v82_v10 }
 0x109   :  { %v124_v46 = vrot.slane %v115_v44, %v118_v38 }
 0x10b   :  { %v125_v47 = vadd.f32 %v124_v46, %v120_v45 }
 0x10d   :  { %v126_v48 = vmax.f32 %v125_v47, 0.0 }
 0x10f   :  { %v127_v49 = vpack.c.bf16 %v126_v48, %v126_v48 }
 0x111   :  { %299 = vmatmul.mubr.msk.bf16.vlgmr.msra.gmra.mrb[0].mxu1 %vm90_vm3, %v127_v49 }
 0x1e4   :  { %v197_v50 = vpop.f32.mrb[0].mxu1 }
 0x1e5   :  { %v205_v51 = vsel %vm90_vm3, %v197_v50, 0.0  ;;  %v213_v52 = vmul.f32 %v197_v50, %v197_v50  ;;  %v300_v53 = vpop.f32.mrb[1].mxu1 }
 0x1e6   :  { %v206_v54 = vrot.slane %v205_v51, 4  ;;  %v200_v55 = vpop.f32.mrb[2].mxu1 }
 0x1e7   :  { %v214_v56 = vsel %vm90_vm3, %v213_v52, 0.0  ;;  %v301_v57 = vpop.f32.mrb[3].mxu1 }
 0x1e8   :  { %v207_v58 = vadd.f32 %v206_v54, %v205_v51  ;;  %v215_v59 = vrot.slane %v214_v56, 4 }
 0x1ea   :  { %v208_v60 = vrot.slane %v207_v58, 2  ;;  %v216_v61 = vadd.f32 %v215_v59, %v214_v56 }
 0x1ec   :  { %v209_v62 = vadd.f32 %v208_v60, %v207_v58  ;;  %v217_v63 = vrot.slane %v216_v61, 2 }
 0x1ee   :  { %v210_v0 = vrot.slane %v209_v62, 1  ;;  %v218_v1 = vadd.f32 %v217_v63, %v216_v61 }
 0x1f0   :  { %v211_v2 = vadd.f32 %v210_v0, %v209_v62  ;;  %v219_v3 = vrot.slane %v218_v1, 1 }
 0x1f2   :  { %v212_v4 = vmul.f32 0.125, %v211_v2  ;;  %v220_v5 = vadd.f32 %v219_v3, %v218_v1 }
 0x1f4   :  { %v221_v6 = vmul.f32 0.125, %v220_v5  ;;  %v222_v7 = vmul.f32 %v212_v4, %v212_v4 }
 0x1f6   :  { %v223_v8 = vsub.f32 %v221_v6, %v222_v7 }
 0x1f8   :  { %v224_v9 = vmax.f32 %v223_v8, 0.0 }
 0x1fa   :  { %v225_v10 = vadd.f32 1e-05, %v224_v9 }
 0x1fc   :  { %315 = vrsqrt.f32 %v225_v10 }
 0x206   :  { %v316_v12 = vpop.eup %315 }
 0x207   :  { %v227_v13 = vmul.f32 %v316_v12, %v203_v11 }
 0x209   :  { %v228_v15 = vmul.f32 %v227_v13, %v212_v4  ;;  %v233_v16 = vrot.slane %v227_v13, %v118_v38 }
 0x20b   :  { %v229_v17 = vsub.f32 %v204_v14, %v228_v15  ;;  %v234_v18 = vmul.f32 %v233_v16, %v197_v50 }
 0x20d   :  { %v238_v19 = vrot.slane %v229_v17, %v118_v38 }
 0x20f   :  { %v239_v20 = vadd.f32 %v238_v19, %v234_v18 }
 0x211   :  { %241 = vrot.lane.b32.xlu0 %v239_v20, %s343_s10 }
 0x283   :  { %v242_v21 = vpop.permute.xlu0 %241 }
 0x284   :  { %v244_v22 = vadd.f32 %v242_v21, %v239_v20 }
 0x286   :  { %v245_v23 = vmax.f32 %v244_v22, 0.0 }
 0x288   :  { %247 = vst.msk [vmem:[#allocation2] sm:$0xff] %vm246_vm4, %v245_v23 }
 0x289   :  { %328 = shalt.err (!%p325_p4)
}
 0x28a   :  { %s329_s15 = scalar_lea.hbm %s427_s4, 128 }
 0x28b   :  { %p330_p5 = scmp.ne.s32.totalorder %s427_s4, %s329_s15  ;;  %p333_p6 = scmp.lt.u32.totalorder %s329_s15, %s427_s4 }
 0x28d   :  { %p335_p7 = pnand %p333_p6, %p330_p5 }
 0x28f   :  { %338 = shalt.err (!%p335_p7)
}
 0x290   :  { %257 = dma.vmem_to_hbm [thread:$0]  %s255_s12, 128, %s427_s4, [#allocation3]  }
 0x291   :  { %339 = dma.done.wait [#allocation3], 128  }
 0x292   :  { %340 = vsyncadd [#allocation3], 4294967168 }
 0x293   :  { %261 = vsyncpa [#allocation3], 1 }

</bundles_post_ra>
